<compile_context>
chip_gen: v7x
topology: tpu7x:2x2x1
jax: 0.10.0
libtpu: 0.0.40
codegen_flags: <defaults>
</compile_context>

<pallas_src>
import functools

import jax
import jax.numpy as jnp
from jax import lax
from jax.experimental import pallas as pl
from jax.experimental.pallas import tpu as pltpu


def _make_kernel(*, s, p, K, Cin, Cout, Ho2, Wo2, pad_lo_h, pad_lo_w):
    """Builds the fused (phase-decomposed deconv + bias + PReLU) kernel body."""
    PIX = Ho2 * Wo2
    nj = K // s  # taps per spatial dim per phase

    def kernel(alpha_ref, x_ref, w_ref, b_ref, o_ref):
        # alpha_ref: (1,)                        SMEM scalar PReLU slope
        # x_ref:     (n_wshift, 1, Cin, Hh*Wo2)  column-shifted NCHW input
        # w_ref:     (s*s*nj*nj, Cout, Cin)      per-(phase, tap) weights
        # b_ref:     (Cout, 1)                   bias
        # o_ref:     (1, s*s, Cout, Ho2*Wo2)     per-phase, lane-dense output
        a = alpha_ref[0]
        bias = b_ref[...]                        # (Cout, 1) broadcasts on lanes
        idx = 0
        for q_h in range(s):                     # output row sub-position
            c_h = (q_h + p) // s
            for q_w in range(s):                 # output col sub-position
                c_w = (q_w + p) // s
                acc = jnp.zeros((Cout, PIX), jnp.float32)
                for j_h in range(nj):
                    bh = pad_lo_h + c_h - j_h            # static row offset
                    for j_w in range(nj):
                        d = pad_lo_w + c_w - j_w         # static column shift
                        slab = x_ref[d, 0, :,
                                     bh * Wo2: bh * Wo2 + PIX]   # (Cin, PIX)
                        w = w_ref[idx]                            # (Cout, Cin)
                        acc = acc + jnp.dot(
                            w, slab, preferred_element_type=jnp.float32)
                        idx += 1
                acc = acc + bias
                y = jnp.where(acc > 0, acc, a * acc)              # PReLU
                o_ref[0, q_h * s + q_w] = y.astype(o_ref.dtype)

    return kernel


@functools.partial(jax.jit, static_argnames=("stride", "padding"))
def deconv_block_forward(x, weight, bias, alpha, *, stride, padding):
    """ConvTranspose2d(stride, padding) + PReLU, matching PyTorch semantics.

    x:      (N, Cin, H, W)       float32 (NCHW)
    weight: (Cin, Cout, KH, KW)  float32 (PyTorch ConvTranspose2d layout)
    bias:   (Cout,)              float32
    alpha:  ()                   float32 (single shared PReLU slope)
    """
    N, Cin, H, W = x.shape
    _, Cout, KH, KW = weight.shape
    assert KH == KW, "square kernels only"
    K, s, p = KH, stride, padding

    H_out = (H - 1) * s - 2 * p + K
    W_out = (W - 1) * s - 2 * p + K
    # TODO(synk): general K % s != 0 or H_out/W_out % s != 0 (uneven phases)
    # is not needed for this module config; would require kernel/output padding.
    assert K % s == 0 and H_out % s == 0 and W_out % s == 0
    assert K // s - 1 >= p // s >= 0

    Ho2, Wo2 = H_out // s, W_out // s
    PIX = Ho2 * Wo2
    nj = K // s
    min_c = p // s
    max_c = (s - 1 + p) // s
    pad_lo_h = nj - 1 - min_c
    pad_lo_w = nj - 1 - min_c
    pad_hi_h = max(0, max_c + Ho2 - H)
    pad_hi_w = max(0, max_c + Wo2 - W)
    Hh = H + pad_lo_h + pad_hi_h
    n_wshift = pad_lo_w + max_c + 1

    # ---- glue (plain JAX, fused by XLA): halo pad + column-shifted views ----
    x_halo = jnp.pad(x, ((0, 0), (0, 0),
                         (pad_lo_h, pad_hi_h), (pad_lo_w, pad_hi_w)))
    xcols = jnp.stack([x_halo[:, :, :, d:d + Wo2] for d in range(n_wshift)],
                      axis=0)                      # (n_wshift, N, Cin, Hh, Wo2)
    xcols = xcols.reshape(n_wshift, N, Cin, Hh * Wo2)

    # Per-(phase, tap) weight matrices, packed in the kernel's static loop order.
    w_oi = jnp.transpose(weight, (1, 0, 2, 3))     # (Cout, Cin, K, K)
    taps = []
    for q_h in range(s):
        rh = (q_h + p) % s
        for q_w in range(s):
            rw = (q_w + p) % s
            for j_h in range(nj):
                for j_w in range(nj):
                    taps.append(w_oi[:, :, rh + j_h * s, rw + j_w * s])
    w_taps = jnp.stack(taps, axis=0)               # (s*s*nj*nj, Cout, Cin)
    # TODO(synk): cast xcols / w_taps to bf16 here (f32 accumulation stays) if
    # exact float32 parity with the PyTorch module is not required.

    b_mat = bias.reshape(Cout, 1).astype(jnp.float32)
    alpha_arr = jnp.reshape(jnp.asarray(alpha, jnp.float32), (1,))

    kernel = _make_kernel(s=s, p=p, K=K, Cin=Cin, Cout=Cout, Ho2=Ho2, Wo2=Wo2,
                          pad_lo_h=pad_lo_h, pad_lo_w=pad_lo_w)

    out_raw = pl.pallas_call(
        kernel,
        out_shape=jax.ShapeDtypeStruct((N, s * s, Cout, PIX), x.dtype),
        grid=(N,),
        in_specs=[
            pl.BlockSpec(memory_space=pltpu.MemorySpace.SMEM),      # alpha
            pl.BlockSpec((n_wshift, 1, Cin, Hh * Wo2),
                         lambda n: (0, n, 0, 0)),                   # shifted x
            pl.BlockSpec((s * s * nj * nj, Cout, Cin),
                         lambda n: (0, 0, 0)),                      # weights
            pl.BlockSpec((Cout, 1), lambda n: (0, 0)),              # bias
        ],
        out_specs=pl.BlockSpec((1, s * s, Cout, PIX),
                               lambda n: (n, 0, 0, 0)),
        compiler_params=pltpu.CompilerParams(
            dimension_semantics=("parallel",)),
    )(alpha_arr, xcols, w_taps, b_mat)

    # Pixel-shuffle the s*s phases and emit NCHW (single XLA transpose).
    out = out_raw.reshape(N, s, s, Cout, Ho2, Wo2)      # [n, qh, qw, co, t, u]
    out = jnp.transpose(out, (0, 3, 4, 1, 5, 2))        # [n, co, t, qh, u, qw]
    return out.reshape(N, Cout, H_out, W_out)


def _reference(x, weight, bias, alpha, *, stride, padding):
    # Pure-JAX reference: ConvTranspose2d = lhs-dilated conv with flipped kernel.
    _, _, KH, KW = weight.shape
    w_flip = jnp.transpose(weight, (1, 0, 2, 3))[:, :, ::-1, ::-1]  # (Cout,Cin,KH,KW)
    y = lax.conv_general_dilated(
        x, w_flip, window_strides=(1, 1),
        padding=[(KH - 1 - padding,) * 2, (KW - 1 - padding,) * 2],
        lhs_dilation=(stride, stride),
        dimension_numbers=("NCHW", "OIHW", "NCHW"))
    y = y + bias[None, :, None, None]
    return jnp.where(y > 0, y, alpha * y)


if __name__ == "__main__":
    # DeconvBlock(input_size=4, output_size=8, kernel_size=4, stride=2, padding=1)
    N, Cin, Cout = 2, 4, 8
    H = W = 16
    K, stride, padding = 4, 2, 1

    key = jax.random.PRNGKey(0)
    kx, kw_, kb = jax.random.split(key, 3)
    x = jax.random.normal(kx, (N, Cin, H, W), jnp.float32)
    bound = 1.0 / (Cout * K * K) ** 0.5
    weight = jax.random.uniform(kw_, (Cin, Cout, K, K), jnp.float32, -bound, bound)
    bias = jax.random.uniform(kb, (Cout,), jnp.float32, -bound, bound)
    alpha = jnp.float32(0.25)           # PReLU default init

    out = deconv_block_forward(x, weight, bias, alpha, stride=stride, padding=padding)
    out = jax.block_until_ready(out)

    H_out = (H - 1) * stride - 2 * padding + K
    W_out = (W - 1) * stride - 2 * padding + K
    assert out.shape == (N, Cout, H_out, W_out), out.shape

    ref = _reference(x, weight, bias, alpha, stride=stride, padding=padding)
    assert jnp.allclose(out, ref, rtol=1e-4, atol=1e-4), float(jnp.max(jnp.abs(out - ref)))

    print("KERNEL_OK")
</pallas_src>

<mosaic_0001>
module attributes {stable_mosaic.version = 11 : i64} {
  func.func @kernel(%arg0: i32, %arg1: memref<1xf32, #tpu.memory_space<smem>>, %arg2: memref<3x1x4x288xf32, #tpu.memory_space<vmem>>, %arg3: memref<16x8x4xf32, #tpu.memory_space<vmem>>, %arg4: memref<8x1xf32, #tpu.memory_space<vmem>>, %arg5: memref<1x4x8x256xf32, #tpu.memory_space<vmem>>) attributes {dimension_semantics = [#tpu.dimension_semantics<parallel>], iteration_bounds = array<i64: 2>, scalar_prefetch = 0 : i64, scratch_operands = 0 : i64, tpu.core_type = #tpu.core_type<tc>, window_params = [{transform_indices = @transform_0, window_bounds = array<i64: 1>}, {transform_indices = @transform_1, window_bounds = array<i64: 3, 1, 4, 288>}, {pipeline_mode = #tpu.pipeline_mode<synchronous>, transform_indices = @transform_2, window_bounds = array<i64: 16, 8, 4>}, {pipeline_mode = #tpu.pipeline_mode<synchronous>, transform_indices = @transform_3, window_bounds = array<i64: 8, 1>}, {transform_indices = @transform_4, window_bounds = array<i64: 1, 4, 8, 256>}]} {
    %c0 = arith.constant 0 : index
    %0 = memref.load %arg1[%c0] : memref<1xf32, #tpu.memory_space<smem>>
    %c0_0 = arith.constant 0 : index
    %c0_1 = arith.constant 0 : index
    %1 = vector.load %arg4[%c0_0, %c0_1] : memref<8x1xf32, #tpu.memory_space<vmem>>, vector<8x1xf32>
    %cst = arith.constant 0.000000e+00 : f32
    %2 = vector.broadcast %cst : f32 to vector<8x256xf32>
    %c1 = arith.constant 1 : index
    %c0_2 = arith.constant 0 : index
    %c0_3 = arith.constant 0 : index
    %c16 = arith.constant 16 : index
    %3 = vector.load %arg2[%c1, %c0_2, %c0_3, %c16] : memref<3x1x4x288xf32, #tpu.memory_space<vmem>>, vector<1x1x4x256xf32>
    %4 = vector.shape_cast %3 : vector<1x1x4x256xf32> to vector<4x256xf32>
    %c0_4 = arith.constant 0 : index
    %c0_5 = arith.constant 0 : index
    %c0_6 = arith.constant 0 : index
    %5 = vector.load %arg3[%c0_4, %c0_5, %c0_6] : memref<16x8x4xf32, #tpu.memory_space<vmem>>, vector<1x8x4xf32>
    %6 = vector.shape_cast %5 : vector<1x8x4xf32> to vector<8x4xf32>
    %cst_7 = arith.constant dense<0.000000e+00> : vector<8x256xf32>
    %7 = tpu.matmul %6, %4, %cst_7 {dimension_numbers = #tpu.dot_dimension_numbers<[1], [0], [0], [1], [0, 0, 1, 1], [], []>} : vector<8x4xf32>, vector<4x256xf32>, vector<8x256xf32> -> vector<8x256xf32>
    %8 = arith.addf %2, %7 : vector<8x256xf32>
    %c0_8 = arith.constant 0 : index
    %c0_9 = arith.constant 0 : index
    %c0_10 = arith.constant 0 : index
    %c16_11 = arith.constant 16 : index
    %9 = vector.load %arg2[%c0_8, %c0_9, %c0_10, %c16_11] : memref<3x1x4x288xf32, #tpu.memory_space<vmem>>, vector<1x1x4x256xf32>
    %10 = vector.shape_cast %9 : vector<1x1x4x256xf32> to vector<4x256xf32>
    %c1_12 = arith.constant 1 : index
    %c0_13 = arith.constant 0 : index
    %c0_14 = arith.constant 0 : index
    %11 = vector.load %arg3[%c1_12, %c0_13, %c0_14] : memref<16x8x4xf32, #tpu.memory_space<vmem>>, vector<1x8x4xf32>
    %12 = vector.shape_cast %11 : vector<1x8x4xf32> to vector<8x4xf32>
    %cst_15 = arith.constant dense<0.000000e+00> : vector<8x256xf32>
    %13 = tpu.matmul %12, %10, %cst_15 {dimension_numbers = #tpu.dot_dimension_numbers<[1], [0], [0], [1], [0, 0, 1, 1], [], []>} : vector<8x4xf32>, vector<4x256xf32>, vector<8x256xf32> -> vector<8x256xf32>
    %14 = arith.addf %8, %13 : vector<8x256xf32>
    %c1_16 = arith.constant 1 : index
    %c0_17 = arith.constant 0 : index
    %c0_18 = arith.constant 0 : index
    %c0_19 = arith.constant 0 : index
    %15 = vector.load %arg2[%c1_16, %c0_17, %c0_18, %c0_19] : memref<3x1x4x288xf32, #tpu.memory_space<vmem>>, vector<1x1x4x256xf32>
    %16 = vector.shape_cast %15 : vector<1x1x4x256xf32> to vector<4x256xf32>
    %c2 = arith.constant 2 : index
    %c0_20 = arith.constant 0 : index
    %c0_21 = arith.constant 0 : index
    %17 = vector.load %arg3[%c2, %c0_20, %c0_21] : memref<16x8x4xf32, #tpu.memory_space<vmem>>, vector<1x8x4xf32>
    %18 = vector.shape_cast %17 : vector<1x8x4xf32> to vector<8x4xf32>
    %cst_22 = arith.constant dense<0.000000e+00> : vector<8x256xf32>
    %19 = tpu.matmul %18, %16, %cst_22 {dimension_numbers = #tpu.dot_dimension_numbers<[1], [0], [0], [1], [0, 0, 1, 1], [], []>} : vector<8x4xf32>, vector<4x256xf32>, vector<8x256xf32> -> vector<8x256xf32>
    %20 = arith.addf %14, %19 : vector<8x256xf32>
    %c0_23 = arith.constant 0 : index
    %c0_24 = arith.constant 0 : index
    %c0_25 = arith.constant 0 : index
    %c0_26 = arith.constant 0 : index
    %21 = vector.load %arg2[%c0_23, %c0_24, %c0_25, %c0_26] : memref<3x1x4x288xf32, #tpu.memory_space<vmem>>, vector<1x1x4x256xf32>
    %22 = vector.shape_cast %21 : vector<1x1x4x256xf32> to vector<4x256xf32>
    %c3 = arith.constant 3 : index
    %c0_27 = arith.constant 0 : index
    %c0_28 = arith.constant 0 : index
    %23 = vector.load %arg3[%c3, %c0_27, %c0_28] : memref<16x8x4xf32, #tpu.memory_space<vmem>>, vector<1x8x4xf32>
    %24 = vector.shape_cast %23 : vector<1x8x4xf32> to vector<8x4xf32>
    %cst_29 = arith.constant dense<0.000000e+00> : vector<8x256xf32>
    %25 = tpu.matmul %24, %22, %cst_29 {dimension_numbers = #tpu.dot_dimension_numbers<[1], [0], [0], [1], [0, 0, 1, 1], [], []>} : vector<8x4xf32>, vector<4x256xf32>, vector<8x256xf32> -> vector<8x256xf32>
    %26 = arith.addf %20, %25 : vector<8x256xf32>
    %27 = vector.broadcast %1 : vector<8x1xf32> to vector<8x256xf32>
    %28 = arith.addf %26, %27 : vector<8x256xf32>
    %cst_30 = arith.constant 0.000000e+00 : f32
    %29 = vector.broadcast %cst_30 : f32 to vector<8x256xf32>
    %30 = arith.cmpf ogt, %28, %29 : vector<8x256xf32>
    %31 = vector.broadcast %0 : f32 to vector<8x256xf32>
    %32 = arith.mulf %31, %28 : vector<8x256xf32>
    %33 = arith.select %30, %28, %32 : vector<8x256xi1>, vector<8x256xf32>
    %c0_31 = arith.constant 0 : index
    %c0_32 = arith.constant 0 : index
    %c0_33 = arith.constant 0 : index
    %c0_34 = arith.constant 0 : index
    %34 = vector.load %arg5[%c0_31, %c0_32, %c0_33, %c0_34] : memref<1x4x8x256xf32, #tpu.memory_space<vmem>>, vector<1x1x8x256xf32>
    %35 = vector.shape_cast %34 : vector<1x1x8x256xf32> to vector<8x256xf32>
    %36 = vector.shape_cast %33 : vector<8x256xf32> to vector<1x1x8x256xf32>
    tpu.vector_store %arg5[%c0_31, %c0_32, %c0_33, %c0_34], %36 {strides = array<i32>} : memref<1x4x8x256xf32, #tpu.memory_space<vmem>>, vector<1x1x8x256xf32>,
    %cst_35 = arith.constant 0.000000e+00 : f32
    %37 = vector.broadcast %cst_35 : f32 to vector<8x256xf32>
    %c2_36 = arith.constant 2 : index
    %c0_37 = arith.constant 0 : index
    %c0_38 = arith.constant 0 : index
    %c16_39 = arith.constant 16 : index
    %38 = vector.load %arg2[%c2_36, %c0_37, %c0_38, %c16_39] : memref<3x1x4x288xf32, #tpu.memory_space<vmem>>, vector<1x1x4x256xf32>
    %39 = vector.shape_cast %38 : vector<1x1x4x256xf32> to vector<4x256xf32>
    %c4 = arith.constant 4 : index
    %c0_40 = arith.constant 0 : index
    %c0_41 = arith.constant 0 : index
    %40 = vector.load %arg3[%c4, %c0_40, %c0_41] : memref<16x8x4xf32, #tpu.memory_space<vmem>>, vector<1x8x4xf32>
    %41 = vector.shape_cast %40 : vector<1x8x4xf32> to vector<8x4xf32>
    %cst_42 = arith.constant dense<0.000000e+00> : vector<8x256xf32>
    %42 = tpu.matmul %41, %39, %cst_42 {dimension_numbers = #tpu.dot_dimension_numbers<[1], [0], [0], [1], [0, 0, 1, 1], [], []>} : vector<8x4xf32>, vector<4x256xf32>, vector<8x256xf32> -> vector<8x256xf32>
    %43 = arith.addf %37, %42 : vector<8x256xf32>
    %c1_43 = arith.constant 1 : index
    %c0_44 = arith.constant 0 : index
    %c0_45 = arith.constant 0 : index
    %c16_46 = arith.constant 16 : index
    %44 = vector.load %arg2[%c1_43, %c0_44, %c0_45, %c16_46] : memref<3x1x4x288xf32, #tpu.memory_space<vmem>>, vector<1x1x4x256xf32>
    %45 = vector.shape_cast %44 : vector<1x1x4x256xf32> to vector<4x256xf32>
    %c5 = arith.constant 5 : index
    %c0_47 = arith.constant 0 : index
    %c0_48 = arith.constant 0 : index
    %46 = vector.load %arg3[%c5, %c0_47, %c0_48] : memref<16x8x4xf32, #tpu.memory_space<vmem>>, vector<1x8x4xf32>
    %47 = vector.shape_cast %46 : vector<1x8x4xf32> to vector<8x4xf32>
    %cst_49 = arith.constant dense<0.000000e+00> : vector<8x256xf32>
    %48 = tpu.matmul %47, %45, %cst_49 {dimension_numbers = #tpu.dot_dimension_numbers<[1], [0], [0], [1], [0, 0, 1, 1], [], []>} : vector<8x4xf32>, vector<4x256xf32>, vector<8x256xf32> -> vector<8x256xf32>
    %49 = arith.addf %43, %48 : vector<8x256xf32>
    %c2_50 = arith.constant 2 : index
    %c0_51 = arith.constant 0 : index
    %c0_52 = arith.constant 0 : index
    %c0_53 = arith.constant 0 : index
    %50 = vector.load %arg2[%c2_50, %c0_51, %c0_52, %c0_53] : memref<3x1x4x288xf32, #tpu.memory_space<vmem>>, vector<1x1x4x256xf32>
    %51 = vector.shape_cast %50 : vector<1x1x4x256xf32> to vector<4x256xf32>
    %c6 = arith.constant 6 : index
    %c0_54 = arith.constant 0 : index
    %c0_55 = arith.constant 0 : index
    %52 = vector.load %arg3[%c6, %c0_54, %c0_55] : memref<16x8x4xf32, #tpu.memory_space<vmem>>, vector<1x8x4xf32>
    %53 = vector.shape_cast %52 : vector<1x8x4xf32> to vector<8x4xf32>
    %cst_56 = arith.constant dense<0.000000e+00> : vector<8x256xf32>
    %54 = tpu.matmul %53, %51, %cst_56 {dimension_numbers = #tpu.dot_dimension_numbers<[1], [0], [0], [1], [0, 0, 1, 1], [], []>} : vector<8x4xf32>, vector<4x256xf32>, vector<8x256xf32> -> vector<8x256xf32>
    %55 = arith.addf %49, %54 : vector<8x256xf32>
    %c1_57 = arith.constant 1 : index
    %c0_58 = arith.constant 0 : index
    %c0_59 = arith.constant 0 : index
    %c0_60 = arith.constant 0 : index
    %56 = vector.load %arg2[%c1_57, %c0_58, %c0_59, %c0_60] : memref<3x1x4x288xf32, #tpu.memory_space<vmem>>, vector<1x1x4x256xf32>
    %57 = vector.shape_cast %56 : vector<1x1x4x256xf32> to vector<4x256xf32>
    %c7 = arith.constant 7 : index
    %c0_61 = arith.constant 0 : index
    %c0_62 = arith.constant 0 : index
    %58 = vector.load %arg3[%c7, %c0_61, %c0_62] : memref<16x8x4xf32, #tpu.memory_space<vmem>>, vector<1x8x4xf32>
    %59 = vector.shape_cast %58 : vector<1x8x4xf32> to vector<8x4xf32>
    %cst_63 = arith.constant dense<0.000000e+00> : vector<8x256xf32>
    %60 = tpu.matmul %59, %57, %cst_63 {dimension_numbers = #tpu.dot_dimension_numbers<[1], [0], [0], [1], [0, 0, 1, 1], [], []>} : vector<8x4xf32>, vector<4x256xf32>, vector<8x256xf32> -> vector<8x256xf32>
    %61 = arith.addf %55, %60 : vector<8x256xf32>
    %62 = vector.broadcast %1 : vector<8x1xf32> to vector<8x256xf32>
    %63 = arith.addf %61, %62 : vector<8x256xf32>
    %cst_64 = arith.constant 0.000000e+00 : f32
    %64 = vector.broadcast %cst_64 : f32 to vector<8x256xf32>
    %65 = arith.cmpf ogt, %63, %64 : vector<8x256xf32>
    %66 = vector.broadcast %0 : f32 to vector<8x256xf32>
    %67 = arith.mulf %66, %63 : vector<8x256xf32>
    %68 = arith.select %65, %63, %67 : vector<8x256xi1>, vector<8x256xf32>
    %c0_65 = arith.constant 0 : index
    %c1_66 = arith.constant 1 : index
    %c0_67 = arith.constant 0 : index
    %c0_68 = arith.constant 0 : index
    %69 = vector.load %arg5[%c0_65, %c1_66, %c0_67, %c0_68] : memref<1x4x8x256xf32, #tpu.memory_space<vmem>>, vector<1x1x8x256xf32>
    %70 = vector.shape_cast %69 : vector<1x1x8x256xf32> to vector<8x256xf32>
    %71 = vector.shape_cast %68 : vector<8x256xf32> to vector<1x1x8x256xf32>
    tpu.vector_store %arg5[%c0_65, %c1_66, %c0_67, %c0_68], %71 {strides = array<i32>} : memref<1x4x8x256xf32, #tpu.memory_space<vmem>>, vector<1x1x8x256xf32>,
    %cst_69 = arith.constant 0.000000e+00 : f32
    %72 = vector.broadcast %cst_69 : f32 to vector<8x256xf32>
    %c1_70 = arith.constant 1 : index
    %c0_71 = arith.constant 0 : index
    %c0_72 = arith.constant 0 : index
    %c32 = arith.constant 32 : index
    %73 = vector.load %arg2[%c1_70, %c0_71, %c0_72, %c32] : memref<3x1x4x288xf32, #tpu.memory_space<vmem>>, vector<1x1x4x256xf32>
    %74 = vector.shape_cast %73 : vector<1x1x4x256xf32> to vector<4x256xf32>
    %c8 = arith.constant 8 : index
    %c0_73 = arith.constant 0 : index
    %c0_74 = arith.constant 0 : index
    %75 = vector.load %arg3[%c8, %c0_73, %c0_74] : memref<16x8x4xf32, #tpu.memory_space<vmem>>, vector<1x8x4xf32>
    %76 = vector.shape_cast %75 : vector<1x8x4xf32> to vector<8x4xf32>
    %cst_75 = arith.constant dense<0.000000e+00> : vector<8x256xf32>
    %77 = tpu.matmul %76, %74, %cst_75 {dimension_numbers = #tpu.dot_dimension_numbers<[1], [0], [0], [1], [0, 0, 1, 1], [], []>} : vector<8x4xf32>, vector<4x256xf32>, vector<8x256xf32> -> vector<8x256xf32>
    %78 = arith.addf %72, %77 : vector<8x256xf32>
    %c0_76 = arith.constant 0 : index
    %c0_77 = arith.constant 0 : index
    %c0_78 = arith.constant 0 : index
    %c32_79 = arith.constant 32 : index
    %79 = vector.load %arg2[%c0_76, %c0_77, %c0_78, %c32_79] : memref<3x1x4x288xf32, #tpu.memory_space<vmem>>, vector<1x1x4x256xf32>
    %80 = vector.shape_cast %79 : vector<1x1x4x256xf32> to vector<4x256xf32>
    %c9 = arith.constant 9 : index
    %c0_80 = arith.constant 0 : index
    %c0_81 = arith.constant 0 : index
    %81 = vector.load %arg3[%c9, %c0_80, %c0_81] : memref<16x8x4xf32, #tpu.memory_space<vmem>>, vector<1x8x4xf32>
    %82 = vector.shape_cast %81 : vector<1x8x4xf32> to vector<8x4xf32>
    %cst_82 = arith.constant dense<0.000000e+00> : vector<8x256xf32>
    %83 = tpu.matmul %82, %80, %cst_82 {dimension_numbers = #tpu.dot_dimension_numbers<[1], [0], [0], [1], [0, 0, 1, 1], [], []>} : vector<8x4xf32>, vector<4x256xf32>, vector<8x256xf32> -> vector<8x256xf32>
    %84 = arith.addf %78, %83 : vector<8x256xf32>
    %c1_83 = arith.constant 1 : index
    %c0_84 = arith.constant 0 : index
    %c0_85 = arith.constant 0 : index
    %c16_86 = arith.constant 16 : index
    %85 = vector.load %arg2[%c1_83, %c0_84, %c0_85, %c16_86] : memref<3x1x4x288xf32, #tpu.memory_space<vmem>>, vector<1x1x4x256xf32>
    %86 = vector.shape_cast %85 : vector<1x1x4x256xf32> to vector<4x256xf32>
    %c10 = arith.constant 10 : index
    %c0_87 = arith.constant 0 : index
    %c0_88 = arith.constant 0 : index
    %87 = vector.load %arg3[%c10, %c0_87, %c0_88] : memref<16x8x4xf32, #tpu.memory_space<vmem>>, vector<1x8x4xf32>
    %88 = vector.shape_cast %87 : vector<1x8x4xf32> to vector<8x4xf32>
    %cst_89 = arith.constant dense<0.000000e+00> : vector<8x256xf32>
    %89 = tpu.matmul %88, %86, %cst_89 {dimension_numbers = #tpu.dot_dimension_numbers<[1], [0], [0], [1], [0, 0, 1, 1], [], []>} : vector<8x4xf32>, vector<4x256xf32>, vector<8x256xf32> -> vector<8x256xf32>
    %90 = arith.addf %84, %89 : vector<8x256xf32>
    %c0_90 = arith.constant 0 : index
    %c0_91 = arith.constant 0 : index
    %c0_92 = arith.constant 0 : index
    %c16_93 = arith.constant 16 : index
    %91 = vector.load %arg2[%c0_90, %c0_91, %c0_92, %c16_93] : memref<3x1x4x288xf32, #tpu.memory_space<vmem>>, vector<1x1x4x256xf32>
    %92 = vector.shape_cast %91 : vector<1x1x4x256xf32> to vector<4x256xf32>
    %c11 = arith.constant 11 : index
    %c0_94 = arith.constant 0 : index
    %c0_95 = arith.constant 0 : index
    %93 = vector.load %arg3[%c11, %c0_94, %c0_95] : memref<16x8x4xf32, #tpu.memory_space<vmem>>, vector<1x8x4xf32>
    %94 = vector.shape_cast %93 : vector<1x8x4xf32> to vector<8x4xf32>
    %cst_96 = arith.constant dense<0.000000e+00> : vector<8x256xf32>
    %95 = tpu.matmul %94, %92, %cst_96 {dimension_numbers = #tpu.dot_dimension_numbers<[1], [0], [0], [1], [0, 0, 1, 1], [], []>} : vector<8x4xf32>, vector<4x256xf32>, vector<8x256xf32> -> vector<8x256xf32>
    %96 = arith.addf %90, %95 : vector<8x256xf32>
    %97 = vector.broadcast %1 : vector<8x1xf32> to vector<8x256xf32>
    %98 = arith.addf %96, %97 : vector<8x256xf32>
    %cst_97 = arith.constant 0.000000e+00 : f32
    %99 = vector.broadcast %cst_97 : f32 to vector<8x256xf32>
    %100 = arith.cmpf ogt, %98, %99 : vector<8x256xf32>
    %101 = vector.broadcast %0 : f32 to vector<8x256xf32>
    %102 = arith.mulf %101, %98 : vector<8x256xf32>
    %103 = arith.select %100, %98, %102 : vector<8x256xi1>, vector<8x256xf32>
    %c0_98 = arith.constant 0 : index
    %c2_99 = arith.constant 2 : index
    %c0_100 = arith.constant 0 : index
    %c0_101 = arith.constant 0 : index
    %104 = vector.load %arg5[%c0_98, %c2_99, %c0_100, %c0_101] : memref<1x4x8x256xf32, #tpu.memory_space<vmem>>, vector<1x1x8x256xf32>
    %105 = vector.shape_cast %104 : vector<1x1x8x256xf32> to vector<8x256xf32>
    %106 = vector.shape_cast %103 : vector<8x256xf32> to vector<1x1x8x256xf32>
    tpu.vector_store %arg5[%c0_98, %c2_99, %c0_100, %c0_101], %106 {strides = array<i32>} : memref<1x4x8x256xf32, #tpu.memory_space<vmem>>, vector<1x1x8x256xf32>,
    %cst_102 = arith.constant 0.000000e+00 : f32
    %107 = vector.broadcast %cst_102 : f32 to vector<8x256xf32>
    %c2_103 = arith.constant 2 : index
    %c0_104 = arith.constant 0 : index
    %c0_105 = arith.constant 0 : index
    %c32_106 = arith.constant 32 : index
    %108 = vector.load %arg2[%c2_103, %c0_104, %c0_105, %c32_106] : memref<3x1x4x288xf32, #tpu.memory_space<vmem>>, vector<1x1x4x256xf32>
    %109 = vector.shape_cast %108 : vector<1x1x4x256xf32> to vector<4x256xf32>
    %c12 = arith.constant 12 : index
    %c0_107 = arith.constant 0 : index
    %c0_108 = arith.constant 0 : index
    %110 = vector.load %arg3[%c12, %c0_107, %c0_108] : memref<16x8x4xf32, #tpu.memory_space<vmem>>, vector<1x8x4xf32>
    %111 = vector.shape_cast %110 : vector<1x8x4xf32> to vector<8x4xf32>
    %cst_109 = arith.constant dense<0.000000e+00> : vector<8x256xf32>
    %112 = tpu.matmul %111, %109, %cst_109 {dimension_numbers = #tpu.dot_dimension_numbers<[1], [0], [0], [1], [0, 0, 1, 1], [], []>} : vector<8x4xf32>, vector<4x256xf32>, vector<8x256xf32> -> vector<8x256xf32>
    %113 = arith.addf %107, %112 : vector<8x256xf32>
    %c1_110 = arith.constant 1 : index
    %c0_111 = arith.constant 0 : index
    %c0_112 = arith.constant 0 : index
    %c32_113 = arith.constant 32 : index
    %114 = vector.load %arg2[%c1_110, %c0_111, %c0_112, %c32_113] : memref<3x1x4x288xf32, #tpu.memory_space<vmem>>, vector<1x1x4x256xf32>
    %115 = vector.shape_cast %114 : vector<1x1x4x256xf32> to vector<4x256xf32>
    %c13 = arith.constant 13 : index
    %c0_114 = arith.constant 0 : index
    %c0_115 = arith.constant 0 : index
    %116 = vector.load %arg3[%c13, %c0_114, %c0_115] : memref<16x8x4xf32, #tpu.memory_space<vmem>>, vector<1x8x4xf32>
    %117 = vector.shape_cast %116 : vector<1x8x4xf32> to vector<8x4xf32>
    %cst_116 = arith.constant dense<0.000000e+00> : vector<8x256xf32>
    %118 = tpu.matmul %117, %115, %cst_116 {dimension_numbers = #tpu.dot_dimension_numbers<[1], [0], [0], [1], [0, 0, 1, 1], [], []>} : vector<8x4xf32>, vector<4x256xf32>, vector<8x256xf32> -> vector<8x256xf32>
    %119 = arith.addf %113, %118 : vector<8x256xf32>
    %c2_117 = arith.constant 2 : index
    %c0_118 = arith.constant 0 : index
    %c0_119 = arith.constant 0 : index
    %c16_120 = arith.constant 16 : index
    %120 = vector.load %arg2[%c2_117, %c0_118, %c0_119, %c16_120] : memref<3x1x4x288xf32, #tpu.memory_space<vmem>>, vector<1x1x4x256xf32>
    %121 = vector.shape_cast %120 : vector<1x1x4x256xf32> to vector<4x256xf32>
    %c14 = arith.constant 14 : index
    %c0_121 = arith.constant 0 : index
    %c0_122 = arith.constant 0 : index
    %122 = vector.load %arg3[%c14, %c0_121, %c0_122] : memref<16x8x4xf32, #tpu.memory_space<vmem>>, vector<1x8x4xf32>
    %123 = vector.shape_cast %122 : vector<1x8x4xf32> to vector<8x4xf32>
    %cst_123 = arith.constant dense<0.000000e+00> : vector<8x256xf32>
    %124 = tpu.matmul %123, %121, %cst_123 {dimension_numbers = #tpu.dot_dimension_numbers<[1], [0], [0], [1], [0, 0, 1, 1], [], []>} : vector<8x4xf32>, vector<4x256xf32>, vector<8x256xf32> -> vector<8x256xf32>
    %125 = arith.addf %119, %124 : vector<8x256xf32>
    %c1_124 = arith.constant 1 : index
    %c0_125 = arith.constant 0 : index
    %c0_126 = arith.constant 0 : index
    %c16_127 = arith.constant 16 : index
    %126 = vector.load %arg2[%c1_124, %c0_125, %c0_126, %c16_127] : memref<3x1x4x288xf32, #tpu.memory_space<vmem>>, vector<1x1x4x256xf32>
    %127 = vector.shape_cast %126 : vector<1x1x4x256xf32> to vector<4x256xf32>
    %c15 = arith.constant 15 : index
    %c0_128 = arith.constant 0 : index
    %c0_129 = arith.constant 0 : index
    %128 = vector.load %arg3[%c15, %c0_128, %c0_129] : memref<16x8x4xf32, #tpu.memory_space<vmem>>, vector<1x8x4xf32>
    %129 = vector.shape_cast %128 : vector<1x8x4xf32> to vector<8x4xf32>
    %cst_130 = arith.constant dense<0.000000e+00> : vector<8x256xf32>
    %130 = tpu.matmul %129, %127, %cst_130 {dimension_numbers = #tpu.dot_dimension_numbers<[1], [0], [0], [1], [0, 0, 1, 1], [], []>} : vector<8x4xf32>, vector<4x256xf32>, vector<8x256xf32> -> vector<8x256xf32>
    %131 = arith.addf %125, %130 : vector<8x256xf32>
    %132 = vector.broadcast %1 : vector<8x1xf32> to vector<8x256xf32>
    %133 = arith.addf %131, %132 : vector<8x256xf32>
    %cst_131 = arith.constant 0.000000e+00 : f32
    %134 = vector.broadcast %cst_131 : f32 to vector<8x256xf32>
    %135 = arith.cmpf ogt, %133, %134 : vector<8x256xf32>
    %136 = vector.broadcast %0 : f32 to vector<8x256xf32>
    %137 = arith.mulf %136, %133 : vector<8x256xf32>
    %138 = arith.select %135, %133, %137 : vector<8x256xi1>, vector<8x256xf32>
    %c0_132 = arith.constant 0 : index
    %c3_133 = arith.constant 3 : index
    %c0_134 = arith.constant 0 : index
    %c0_135 = arith.constant 0 : index
    %139 = vector.load %arg5[%c0_132, %c3_133, %c0_134, %c0_135] : memref<1x4x8x256xf32, #tpu.memory_space<vmem>>, vector<1x1x8x256xf32>
    %140 = vector.shape_cast %139 : vector<1x1x8x256xf32> to vector<8x256xf32>
    %141 = vector.shape_cast %138 : vector<8x256xf32> to vector<1x1x8x256xf32>
    tpu.vector_store %arg5[%c0_132, %c3_133, %c0_134, %c0_135], %141 {strides = array<i32>} : memref<1x4x8x256xf32, #tpu.memory_space<vmem>>, vector<1x1x8x256xf32>,
    return
  }
  func.func @transform_0(%arg0: i32) -> i32 {
    %c0_i32 = arith.constant 0 : i32
    %c0_i32_0 = arith.constant 0 : i32
    return %c0_i32 : i32
  }
  func.func @transform_1(%arg0: i32) -> (i32, i32, i32, i32) {
    %c0_i32 = arith.constant 0 : i32
    %c0_i32_0 = arith.constant 0 : i32
    %c0_i32_1 = arith.constant 0 : i32
    %c0_i32_2 = arith.constant 0 : i32
    return %c0_i32, %arg0, %c0_i32_0, %c0_i32_1 : i32, i32, i32, i32
  }
  func.func @transform_2(%arg0: i32) -> (i32, i32, i32) {
    %c0_i32 = arith.constant 0 : i32
    %c0_i32_0 = arith.constant 0 : i32
    %c0_i32_1 = arith.constant 0 : i32
    %c0_i32_2 = arith.constant 0 : i32
    return %c0_i32, %c0_i32_0, %c0_i32_1 : i32, i32, i32
  }
  func.func @transform_3(%arg0: i32) -> (i32, i32) {
    %c0_i32 = arith.constant 0 : i32
    %c0_i32_0 = arith.constant 0 : i32
    %c0_i32_1 = arith.constant 0 : i32
    return %c0_i32, %c0_i32_0 : i32, i32
  }
  func.func @transform_4(%arg0: i32) -> (i32, i32, i32, i32) {
    %c0_i32 = arith.constant 0 : i32
    %c0_i32_0 = arith.constant 0 : i32
    %c0_i32_1 = arith.constant 0 : i32
    %c0_i32_2 = arith.constant 0 : i32
    return %arg0, %c0_i32, %c0_i32_0, %c0_i32_1 : i32, i32, i32, i32
  }
}

</mosaic_0001>

<bundles_post_ra>
// kernel: deconv_block_forward.1
= control target key start
LH: loop header
LB: loop body
LE: loop exit
PB: predicated region body
PF: predicated region fallthrough
CT: control target
= control target key end

     0   :  { %s2339_s0 = inlined_call_operand.<no memory space> [shape: f32[1], index: 0, kind: input, shape index: {}]   ;;  %s2340_s1 = inlined_call_operand.vmem [shape: f32[3,2,4,288], index: 1, kind: input, shape index: {}]   ;;  %s2341_s2 = inlined_call_operand.vmem [shape: f32[16,8,4], index: 2, kind: input, shape index: {}]   ;;  %s2342_s3 = inlined_call_operand.vmem [shape: f32[8,1], index: 3, kind: input, shape index: {}]   ;;  %s2343_s4 = inlined_call_operand.vmem [shape: f32[2,4,8,256], index: 4, kind: output, shape index: {}]  }
   0x1   :  { %9 = sst [smem:[#allocation2]] %s2339_s0 }
   0x2   :  { %s2045_s17 = smov 0   ;;  %s2047_s18 = smov 0  }
   0x3   :  { %s2049_s19 = smov 0  }
   0x4 LB: > { %s1823_s0 = sadd.s32 4294967295, %s2011_s19   ;;  %s2062_s20 = sadd.s32 1, %s2011_s19   ;;  %s2011_s19 = sphi %s2049_s19, %s2346_s19   ;;  %s2007_s18 = sphi %s2047_s18, %s2345_s18   ;;  %s2003_s17 = sphi %s2045_s17, %s2344_s17  }
   0x5   : > { %s40_s21 = ssub.s32 %s2011_s19, %s2062_s20  ;;  %s43_s22 = sadd.s32 1, %s2007_s18 }
   0x6   : > { %p41_p0 = scmp.eq.s32.totalorder %s40_s21, 0  ;;  %p50_p1 = scmp.ne.s32.totalorder %s2007_s18, %s2003_s17 }
   0x7   : > { %p51_p2 = scmp.eq.s32.totalorder %s2011_s19, 0  ;;  %p1826_p4 = scmp.ge.s32.totalorder %s2011_s19, 2 }
   0x8   : > { %s2071_s23 = scalar_select %p41_p0, %s2007_s18, %s43_s22  }
   0x9   : > { %p52_p3 = por %p51_p2, %p50_p1  ;;  %153 = sbr.rel (%p1826_p4) target bundleno = 24 (0x18), region = 28 }
  0x10   : > { %156 = sbr.rel (!%p52_p3) target bundleno = 24 (0x18), region = 32  ;;  %s158_s24 = sand.u32 (%p52_p3), 1, %s2007_s18  }
  0x11   : > { %s1955_s25 = smul.u32 (%p52_p3), 12, %s2011_s19 }
  0x12   : > { %s1954_s26 = smul.u32 (%p52_p3), 36, %s158_s24 }
  0x13   : > { %s163_s29 = scalar_lea.vmem (%p52_p3), %s2340_s1, %s1955_s25 }
  0x14   : > { %v178_v0 = vld [vmem:[%s163_s29] sm:$0xff] (%p52_p3)  ;;  %v180_v1 = vld [vmem:[%s163_s29 + $0x18] sm:$0xff] (%p52_p3)  ;;  %v182_v2 = vld [vmem:[%s163_s29 + $0x30] sm:$0xff] (%p52_p3)  ;;  %s160_s30 = scalar_lea.vmem (%p52_p3), [#allocation3], %s1954_s26 }
  0x15   : > { %179 = vst [vmem:[%s160_s30] sm:$0xff] (%p52_p3), %v178_v0  ;;  %181 = vst [vmem:[%s160_s30 + $0xc] sm:$0xff] (%p52_p3), %v180_v1  ;;  %v1828_v3 = vld [vmem:[%s163_s29 + $0x8] sm:$0xf] (%p52_p3)  ;;  %v1830_v4 = vld [vmem:[%s163_s29 + $0x20] sm:$0xf] (%p52_p3) }
  0x16   : > { %183 = vst [vmem:[%s160_s30 + $0x18] sm:$0xff] (%p52_p3), %v182_v2  ;;  %v1832_v5 = vld [vmem:[%s163_s29 + $0x38] sm:$0xf] (%p52_p3)  ;;  %1829 = vst [vmem:[%s160_s30 + $0x8] sm:$0xf] (%p52_p3), %v1828_v3 }
  0x17   : > { %1831 = vst [vmem:[%s160_s30 + $0x14] sm:$0xf] %v1830_v4  ;;  %1833 = vst [vmem:[%s160_s30 + $0x20] sm:$0xf] %v1832_v5 }
  0x18 PF: > { %p1834_p5 = scmp.ge.s32.totalorder %s2011_s19, 1  ;;  %p201_p6 = scmp.lt.s32.totalorder %s2011_s19, 3 }
  0x1a   : > { %p202_p7 = pnand %p1834_p5, %p201_p6 }
  0x1b   : > { %s208_s5 = sand.u32 (!%p202_p7), 1, %s2003_s17   ;;  %s2013_s8 = smov (!%p202_p7), 112   ;;  %v2014_v12 = vmov (!%p202_p7), 0.0   ;;  %v2016_v24 = vmov (!%p202_p7), 0   ;;  %v239_v26 = vld [vmem:[%s2342_s3] sm:$0xff] (!%p202_p7)  ;;  %vm257_vm0 = vcmask (!%p202_p7), 916480  }
  0x1c   : > { %205 = sbr.rel (%p202_p7) target bundleno = 437 (0x1b5), region = 58  ;;  %333 = vmatprep.mubr.f32.mxu0 (!%p202_p7), %v2014_v12  ;;  %706 = vmatprep.mubr.f32.mxu1 (!%p202_p7), %v2014_v12  ;;  %s2015_s9 = smov (!%p202_p7), 96   ;;  %vm264_vm1 = vcmask (!%p202_p7), 1043456   ;;  %v1839_v35 = vld [vmem:[%s2341_s2 + $0x8] sm:$0xff] (!%p202_p7)  ;;  %vm260_vm2 = vcmask (!%p202_p7), 31744   ;;  %v243_v47 = vld [vmem:[%s2341_s2] sm:$0xff] (!%p202_p7) }
  0x1d   : > { %s1956_s6 = smul.u32 (!%p202_p7), 36, %s208_s5  ;;  %1985 = vset.pattern.permute.xlu0 (!%p202_p7), %v2016_v24  ;;  %v1860_v36 = vld [vmem:[%s2341_s2 + $0x28] sm:$0xff] (!%p202_p7)  ;;  %v1857_v48 = vld [vmem:[%s2341_s2 + $0x20] sm:$0xff] (!%p202_p7)  ;;  %v1847_v55 = vld [vmem:[%s2341_s2 + $0x10] sm:$0xff] (!%p202_p7)  ;;  %vm1000_vm3 = vcmask (!%p202_p7), 785408   ;;  %p233_p8 = scmp.lt.s32.totalorder (!%p202_p7), %s1823_s0, 1 }
  0x1e   : > { %v1868_v56 = vld [vmem:[%s2341_s2 + $0x30] sm:$0xff] (!%p202_p7)  ;;  %v1851_v63 = vld [vmem:[%s2341_s2 + $0x18] sm:$0xff] (!%p202_p7)  ;;  %s238_s26 = sld [smem:[#allocation2]] (!%p202_p7) }
  0x1f   : > { %s2082_s7 = scalar_lea.vmem (!%p202_p7), [#allocation3], %s1956_s6  ;;  %v1873_v0 = vld [vmem:[%s2341_s2 + $0x38] sm:$0xff] (!%p202_p7)  ;;  %v1891_v24 = vld [vmem:[%s2341_s2 + $0x50] sm:$0xff] (!%p202_p7) }
  0x20   : > { %v1859_v6 = vld [vmem:[%s2082_s7 + $0x14] sm:$0xf] (!%p202_p7)  ;;  %v245_v7 = vld [vmem:[%s2082_s7 + $0x8] sm:$0xf] (!%p202_p7)  ;;  %v2087_v8 = vld [vmem:[%s2082_s7 + $0xc] sm:$0xff] (!%p202_p7) }
  0x21   : > { %631 = vrot.lane.b32.xlu1 (!%p202_p7), %v1859_v6, %s2013_s8  ;;  %255 = vrot.lane.b32.xlu0 (!%p202_p7), %v245_v7, %s2013_s8  ;;  %v2093_v9 = vcombine.high (!%p202_p7), %v2087_v8, %v2087_v8  ;;  %v2096_v10 = vld [vmem:[%s2082_s7] sm:$0xff] (!%p202_p7)  ;;  %v1838_v13 = vld [vmem:[%s2082_s7 + $0x14] sm:$0xf] (!%p202_p7) }
  0x22   : > { %v2100_v11 = vcombine.high (!%p202_p7), %v2096_v10, %v2096_v10  ;;  %v2114_v14 = vld [vmem:[%s2082_s7 + $0x18] sm:$0xff] (!%p202_p7)  ;;  %v1856_v16 = vld [vmem:[%s2082_s7 + $0x20] sm:$0xf] (!%p202_p7)  ;;  %v988_v17 = vld [vmem:[%s2082_s7 + $0x8] sm:$0xf] (!%p202_p7) }
  0x23   : > { %v2121_v15 = vcombine.high %v2114_v14, %v2114_v14  ;;  %v1905_v18 = vld [vmem:[%s2082_s7 + $0x14] sm:$0xf]  ;;  %v1902_v20 = vld [vmem:[%s2082_s7 + $0x20] sm:$0xf]  ;;  %v1266_v23 = vld [vmem:[%s2082_s7 + $0x8] sm:$0xf] }
  0x24   : > { %v1880_v19 = vld [vmem:[%s2082_s7 + $0x14] sm:$0xf]  ;;  %v1914_v22 = vld [vmem:[%s2082_s7 + $0x20] sm:$0xf]  ;;  %v1882_v6 = vld [vmem:[%s2341_s2 + $0x48] sm:$0xff]  ;;  %s2348_s0 = smov (!%p233_p8, %s1823_s0), 1 }
  0x25   : > { %629 = vrot.lane.b32.xlu1 %v2093_v9, %s2013_s8  ;;  %253 = vrot.lane.b32.xlu0 %v2100_v11, %s2013_s8  ;;  %v1890_v21 = vld [vmem:[%s2082_s7 + $0x14] sm:$0xf]  ;;  %v1906_v7 = vld [vmem:[%s2341_s2 + $0x68] sm:$0xff]  ;;  %s1929_s27 = sshll.u32 %s2348_s0, 6 }
  0x26   : > { %v1920_v25 = vld [vmem:[%s2082_s7 + $0x14] sm:$0xf]  ;;  %s2319_s30 = scalar_lea.vmem %s2343_s4, %s1929_s27 }
  0x29   : > { %627 = vrot.lane.b32.xlu1 %v2087_v8, %s2013_s8  ;;  %251 = vrot.lane.b32.xlu0 %v2096_v10, %s2013_s8 }
  0x2d   : > { %347 = vrot.lane.b32.xlu1 %v1838_v13, %s2013_s8  ;;  %345 = vrot.lane.b32.xlu0 %v2093_v9, %s2013_s8 }
  0x31   : > { %720 = vrot.lane.b32.xlu1 %v1856_v16, %s2013_s8  ;;  %718 = vrot.lane.b32.xlu0 %v2121_v15, %s2013_s8  ;;  %v1881_v16 = vld [vmem:[%s2341_s2 + $0x40] sm:$0xff] }
  0x35   : > { %716 = vrot.lane.b32.xlu1 %v2114_v14, %s2013_s8  ;;  %343 = vrot.lane.b32.xlu0 %v2087_v8, %s2013_s8 }
  0x39   : > { %998 = vrot.lane.b32.xlu1 %v988_v17, %s2015_s9  ;;  %996 = vrot.lane.b32.xlu0 %v2100_v11, %s2015_s9  ;;  %v1903_v17 = vld [vmem:[%s2341_s2 + $0x60] sm:$0xff] }
  0x3d   : > { %1386 = vrot.lane.b32.xlu1 %v1905_v18, %s2015_s9  ;;  %1384 = vrot.lane.b32.xlu0 %v2093_v9, %s2015_s9 }
  0x41   : > { %1382 = vrot.lane.b32.xlu1 %v2087_v8, %s2015_s9  ;;  %994 = vrot.lane.b32.xlu0 %v2096_v10, %s2015_s9 }
  0x45   : > { %1088 = vrot.lane.b32.xlu1 %v1880_v19, %s2015_s9  ;;  %1086 = vrot.lane.b32.xlu0 %v2093_v9, %s2015_s9 }
  0x49   : > { %1475 = vrot.lane.b32.xlu1 %v1902_v20, %s2015_s9  ;;  %1473 = vrot.lane.b32.xlu0 %v2121_v15, %s2015_s9 }
  0x4d   : > { %1471 = vrot.lane.b32.xlu1 %v2114_v14, %s2015_s9  ;;  %1084 = vrot.lane.b32.xlu0 %v2087_v8, %s2015_s9 }
  0x51   : > { %1181 = vrot.lane.b32.xlu1 %v1890_v21, %s2013_s8  ;;  %1179 = vrot.lane.b32.xlu0 %v2093_v9, %s2013_s8 }
  0x55   : > { %1568 = vrot.lane.b32.xlu1 %v1914_v22, %s2013_s8  ;;  %1566 = vrot.lane.b32.xlu0 %v2121_v15, %s2013_s8 }
  0x59   : > { %1564 = vrot.lane.b32.xlu1 %v2114_v14, %s2013_s8  ;;  %1177 = vrot.lane.b32.xlu0 %v2087_v8, %s2013_s8 }
  0x5d   : > { %1276 = vrot.lane.b32.xlu1 %v1266_v23, %s2013_s8  ;;  %1274 = vrot.lane.b32.xlu0 %v2100_v11, %s2013_s8 }
  0x61   : > { %1663 = vrot.lane.b32.xlu1 %v1920_v25, %s2013_s8  ;;  %1661 = vrot.lane.b32.xlu0 %v2093_v9, %s2013_s8  ;;  %v1915_v25 = vld [vmem:[%s2341_s2 + $0x70] sm:$0xff] }
  0x65   : > { %1659 = vrot.lane.b32.xlu1 %v2087_v8, %s2013_s8  ;;  %1272 = vrot.lane.b32.xlu0 %v2096_v10, %s2013_s8 }
  0x69   : > { %601 = vperm.xlu0 %1985, %v239_v26  }
  0x93   : > { %v632_v27 = vpop.permute.xlu1 %631  ;;  %v256_v28 = vpop.permute.xlu0 %255 }
  0x97   : > { %v630_v29 = vpop.permute.xlu1 %629  ;;  %v254_v30 = vpop.permute.xlu0 %253 }
  0x98   : > { %v259_v31 = vsel %vm257_vm0, %v254_v30, %v256_v28  ;;  %v634_v32 = vsel %vm257_vm0, %v630_v29, %v632_v27 }
  0x99   : > { %1840 = vmatprep.subr.msk.mxu0 %vm264_vm1, %v259_v31  ;;  %1861 = vmatprep.subr.msk.mxu1 %vm264_vm1, %v634_v32 }
  0x9b   : > { %v628_v33 = vpop.permute.xlu1 %627  ;;  %v252_v34 = vpop.permute.xlu0 %251 }
  0x9c   : > { %v258_v37 = vsel %vm257_vm0, %v252_v34, %v254_v30  ;;  %v633_v38 = vsel %vm257_vm0, %v628_v33, %v630_v29 }
  0x9d   : > { %1841 = vmatpush1.msk.msra.mxu0 %vm264_vm1, %v258_v37  ;;  %1862 = vmatpush1.msk.msra.mxu1 %vm264_vm1, %v633_v38 }
  0x9e   : > { %1842 = vmatmul.mubr.msk.f32.vlgmr.msra.gmra.mrb[0].mxu0 %vm260_vm2, %v1839_v35  ;;  %1863 = vmatmul.mubr.msk.f32.vlgmr.msra.gmra.mrb[0].mxu1 %vm260_vm2, %v1860_v36  ;;  %v1895_v36 = vld [vmem:[%s2341_s2 + $0x58] sm:$0xff] }
  0x9f   : > { %v348_v39 = vpop.permute.xlu1 %347  ;;  %v346_v40 = vpop.permute.xlu0 %345  ;;  %422 = vmatprep.mubr.f32.mxu0 %v2014_v12  ;;  %795 = vmatprep.mubr.f32.mxu1 %v2014_v12 }
  0xa0   : > { %v350_v41 = vsel %vm257_vm0, %v346_v40, %v348_v39 }
  0xa1   : > { %1843 = vmatprep.subr.msk.mxu0 %vm264_vm1, %v350_v41 }
  0xa3   : > { %v721_v42 = vpop.permute.xlu1 %720  ;;  %v719_v43 = vpop.permute.xlu0 %718 }
  0xa4   : > { %v723_v44 = vsel %vm257_vm0, %v719_v43, %v721_v42  ;;  %v608_v42 = vstv %s238_s26 }
  0xa5   : > { %1864 = vmatprep.subr.msk.mxu1 %vm264_vm1, %v723_v44 }
  0xa7   : > { %v717_v45 = vpop.permute.xlu1 %716  ;;  %v344_v46 = vpop.permute.xlu0 %343 }
  0xa8   : > { %v722_v49 = vsel %vm257_vm0, %v717_v45, %v719_v43  ;;  %v349_v50 = vsel %vm257_vm0, %v344_v46, %v346_v40 }
  0xa9   : > { %1844 = vmatpush1.msk.msra.mxu0 %vm264_vm1, %v349_v50  ;;  %1865 = vmatpush1.msk.msra.mxu1 %vm264_vm1, %v722_v49 }
  0xaa   : > { %1845 = vmatmul.mubr.msk.f32.vlgmr.msra.gmra.mrb[0].mxu0 %vm260_vm2, %v243_v47  ;;  %1866 = vmatmul.mubr.msk.f32.vlgmr.msra.gmra.mrb[0].mxu1 %vm260_vm2, %v1857_v48 }
  0xab   : > { %v999_v51 = vpop.permute.xlu1 %998  ;;  %v997_v52 = vpop.permute.xlu0 %996  ;;  %1848 = vmatprep.subr.msk.mxu0 %vm264_vm1, %v2093_v9  ;;  %1869 = vmatprep.subr.msk.mxu1 %vm264_vm1, %v2121_v15 }
  0xac   : > { %1849 = vmatpush1.msk.msra.mxu0 %vm264_vm1, %v2087_v8  ;;  %1870 = vmatpush1.msk.msra.mxu1 %vm264_vm1, %v2114_v14  ;;  %v1002_v57 = vsel %vm1000_vm3, %v997_v52, %v999_v51 }
  0xad   : > { %505 = vmatprep.mubr.f32.mxu0 %v2014_v12  ;;  %1852 = vmatprep.subr.msk.mxu0 %vm264_vm1, %v2100_v11 }
  0xae   : > { %878 = vmatprep.mubr.f32.mxu1 %v2014_v12  ;;  %1874 = vmatprep.subr.msk.mxu1 %vm264_vm1, %v2093_v9 }
  0xaf   : > { %v1387_v53 = vpop.permute.xlu1 %1386  ;;  %v1385_v54 = vpop.permute.xlu0 %1384 }
  0xb0   : > { %v1389_v58 = vsel %vm1000_vm3, %v1385_v54, %v1387_v53 }
  0xb2   : > { %1850 = vmatmul.mubr.msk.f32.vlgmr.msra.gmra.mrb[0].mxu0 %vm260_vm2, %v1847_v55  ;;  %1871 = vmatmul.mubr.msk.f32.vlgmr.msra.gmra.mrb[0].mxu1 %vm260_vm2, %v1868_v56 }
  0xb3   : > { %1853 = vmatpush1.msk.msra.mxu0 %vm264_vm1, %v2096_v10  ;;  %1875 = vmatpush1.msk.msra.mxu1 %vm264_vm1, %v2087_v8  ;;  %v1383_v59 = vpop.permute.xlu1 %1382  ;;  %v995_v60 = vpop.permute.xlu0 %994 }
  0xb4   : > { %1883 = vmatprep.subr.msk.mxu0 %vm264_vm1, %v1002_v57  ;;  %1907 = vmatprep.subr.msk.mxu1 %vm264_vm1, %v1389_v58  ;;  %v1388_v1 = vsel %vm1000_vm3, %v1383_v59, %v1385_v54  ;;  %v1001_v2 = vsel %vm1000_vm3, %v995_v60, %v997_v52 }
  0xb5   : > { %590 = vmatprep.mubr.f32.mxu0 %v2014_v12  ;;  %963 = vmatprep.mubr.f32.mxu1 %v2014_v12 }
  0xb7   : > { %v1089_v61 = vpop.permute.xlu1 %1088  ;;  %v1087_v62 = vpop.permute.xlu0 %1086 }
  0xb8   : > { %v1091_v3 = vsel %vm1000_vm3, %v1087_v62, %v1089_v61 }
  0xba   : > { %1854 = vmatmul.mubr.msk.f32.vlgmr.msra.gmra.mrb[0].mxu0 %vm260_vm2, %v1851_v63  ;;  %1876 = vmatmul.mubr.msk.f32.vlgmr.msra.gmra.mrb[0].mxu1 %vm260_vm2, %v1873_v0 }
  0xbb   : > { %1884 = vmatpush1.msk.msra.mxu0 %vm264_vm1, %v1001_v2  ;;  %1908 = vmatpush1.msk.msra.mxu1 %vm264_vm1, %v1388_v1  ;;  %v1476_v4 = vpop.permute.xlu1 %1475  ;;  %v1474_v5 = vpop.permute.xlu0 %1473 }
  0xbc   : > { %1886 = vmatprep.subr.msk.mxu0 %vm264_vm1, %v1091_v3  ;;  %v1478_v8 = vsel %vm1000_vm3, %v1474_v5, %v1476_v4  ;;  %1074 = vmatprep.mubr.f32.mxu0 %v2014_v12 }
  0xbd   : > { %1910 = vmatprep.subr.msk.mxu1 %vm264_vm1, %v1478_v8  ;;  %1461 = vmatprep.mubr.f32.mxu1 %v2014_v12 }
  0xbe   : > { %1885 = vmatmul.mubr.msk.f32.vlgmr.msra.gmra.mrb[2].mxu0 %vm260_vm2, %v1882_v6  ;;  %1909 = vmatmul.mubr.msk.f32.vlgmr.msra.gmra.mrb[2].mxu1 %vm260_vm2, %v1906_v7 }
  0xbf   : > { %v1472_v9 = vpop.permute.xlu1 %1471  ;;  %v1085_v10 = vpop.permute.xlu0 %1084  ;;  %1163 = vmatprep.mubr.f32.mxu0 %v2014_v12  ;;  %1550 = vmatprep.mubr.f32.mxu1 %v2014_v12 }
  0xc0   : > { %v1477_v11 = vsel %vm1000_vm3, %v1472_v9, %v1474_v5  ;;  %v1090_v13 = vsel %vm1000_vm3, %v1085_v10, %v1087_v62 }
  0xc1   : > { %1887 = vmatpush1.msk.msra.mxu0 %vm264_vm1, %v1090_v13  ;;  %1911 = vmatpush1.msk.msra.mxu1 %vm264_vm1, %v1477_v11 }
  0xc3   : > { %v1182_v14 = vpop.permute.xlu1 %1181  ;;  %v1180_v15 = vpop.permute.xlu0 %1179 }
  0xc4   : > { %v1184_v18 = vsel %vm257_vm0, %v1180_v15, %v1182_v14 }
  0xc5   : > { %1892 = vmatprep.subr.msk.mxu0 %vm264_vm1, %v1184_v18 }
  0xc6   : > { %1888 = vmatmul.mubr.msk.f32.vlgmr.msra.gmra.mrb[2].mxu0 %vm260_vm2, %v1881_v16  ;;  %1912 = vmatmul.mubr.msk.f32.vlgmr.msra.gmra.mrb[2].mxu1 %vm260_vm2, %v1903_v17 }
  0xc7   : > { %v1569_v19 = vpop.permute.xlu1 %1568  ;;  %v1567_v20 = vpop.permute.xlu0 %1566  ;;  %1256 = vmatprep.mubr.f32.mxu0 %v2014_v12  ;;  %1643 = vmatprep.mubr.f32.mxu1 %v2014_v12 }
  0xc8   : > { %v1571_v21 = vsel %vm257_vm0, %v1567_v20, %v1569_v19 }
  0xc9   : > { %1916 = vmatprep.subr.msk.mxu1 %vm264_vm1, %v1571_v21 }
  0xcb   : > { %v1565_v22 = vpop.permute.xlu1 %1564  ;;  %v1178_v23 = vpop.permute.xlu0 %1177 }
  0xcc   : > { %v1570_v26 = vsel %vm257_vm0, %v1565_v22, %v1567_v20  ;;  %v1183_v27 = vsel %vm257_vm0, %v1178_v23, %v1180_v15 }
  0xcd   : > { %1893 = vmatpush1.msk.msra.mxu0 %vm264_vm1, %v1183_v27  ;;  %1917 = vmatpush1.msk.msra.mxu1 %vm264_vm1, %v1570_v26 }
  0xce   : > { %1894 = vmatmul.mubr.msk.f32.vlgmr.msra.gmra.mrb[2].mxu0 %vm260_vm2, %v1891_v24  ;;  %1918 = vmatmul.mubr.msk.f32.vlgmr.msra.gmra.mrb[2].mxu1 %vm260_vm2, %v1915_v25 }
  0xcf   : > { %v1277_v28 = vpop.permute.xlu1 %1276  ;;  %v1275_v29 = vpop.permute.xlu0 %1274  ;;  %1351 = vmatprep.mubr.f32.mxu0 %v2014_v12  ;;  %1738 = vmatprep.mubr.f32.mxu1 %v2014_v12  ;;  %v1921_v12 = vld [vmem:[%s2341_s2 + $0x78] sm:$0xff] }
  0xd0   : > { %v1279_v30 = vsel %vm257_vm0, %v1275_v29, %v1277_v28 }
  0xd1   : > { %1896 = vmatprep.subr.msk.mxu0 %vm264_vm1, %v1279_v30 }
  0xd3   : > { %v1664_v31 = vpop.permute.xlu1 %1663  ;;  %v1662_v32 = vpop.permute.xlu0 %1661 }
  0xd4   : > { %v1666_v33 = vsel %vm257_vm0, %v1662_v32, %v1664_v31 }
  0xd5   : > { %1922 = vmatprep.subr.msk.mxu1 %vm264_vm1, %v1666_v33 }
  0xd7   : > { %v1660_v34 = vpop.permute.xlu1 %1659  ;;  %v1273_v35 = vpop.permute.xlu0 %1272 }
  0xd8   : > { %v1665_v37 = vsel %vm257_vm0, %v1660_v34, %v1662_v32  ;;  %v1278_v38 = vsel %vm257_vm0, %v1273_v35, %v1275_v29 }
  0xd9   : > { %1897 = vmatpush1.msk.msra.mxu0 %vm264_vm1, %v1278_v38  ;;  %1923 = vmatpush1.msk.msra.mxu1 %vm264_vm1, %v1665_v37 }
  0xda   : > { %1898 = vmatmul.mubr.msk.f32.vlgmr.msra.gmra.mrb[2].mxu0 %vm260_vm2, %v1895_v36  ;;  %1924 = vmatmul.mubr.msk.f32.vlgmr.msra.gmra.mrb[2].mxu1 %vm260_vm2, %v1921_v12 }
  0xe8   : > { %v602_v39 = vpop.permute.xlu0 %601 }
 0x18d   : > { %v592_v40 = vpop.f32.mrb[0].mxu0  ;;  %v965_v41 = vpop.f32.mrb[0].mxu1 }
 0x18e   : > { %v604_v43 = vadd.f32 %v602_v39, %v592_v40  ;;  %v972_v44 = vadd.f32 %v965_v41, %v602_v39  ;;  %v594_v45 = vpop.f32.mrb[1].mxu0  ;;  %v967_v46 = vpop.f32.mrb[1].mxu1 }
 0x18f   : > { %v605_v47 = vadd.f32 %v602_v39, %v594_v45  ;;  %v973_v48 = vadd.f32 %v967_v46, %v602_v39 }
 0x190   : > { %vm606_vm4 = vcmp.gt.f32.partialorder %v604_v43, 0.0  ;;  %v609_v49 = vmul.f32 %v608_v42, %v604_v43  ;;  %vm974_vm5 = vcmp.gt.f32.partialorder %v972_v44, 0.0  ;;  %v976_v50 = vmul.f32 %v972_v44, %v608_v42 }
 0x191   : > { %vm607_vm6 = vcmp.gt.f32.partialorder %v605_v47, 0.0  ;;  %v610_v51 = vmul.f32 %v608_v42, %v605_v47  ;;  %vm975_vm7 = vcmp.gt.f32.partialorder %v973_v48, 0.0  ;;  %v977_v52 = vmul.f32 %v973_v48, %v608_v42 }
 0x192   : > { %v611_v53 = vsel %vm606_vm4, %v604_v43, %v609_v49  ;;  %v978_v54 = vsel %vm974_vm5, %v972_v44, %v976_v50 }
 0x193   : > { %613 = vst [vmem:[%s2319_s30] sm:$0xff] %v611_v53  ;;  %1877 = vst [vmem:[%s2319_s30 + $0x10] sm:$0xff] %v978_v54  ;;  %v612_v55 = vsel %vm607_vm6, %v605_v47, %v610_v51  ;;  %v979_v56 = vsel %vm975_vm7, %v973_v48, %v977_v52 }
 0x194   : > { %614 = vst [vmem:[%s2319_s30 + $0x8] sm:$0xff] %v612_v55  ;;  %1878 = vst [vmem:[%s2319_s30 + $0x18] sm:$0xff] %v979_v56 }
 0x1ad   : > { %v1353_v57 = vpop.f32.mrb[2].mxu0  ;;  %v1740_v58 = vpop.f32.mrb[2].mxu1 }
 0x1ae   : > { %v1360_v59 = vadd.f32 %v1353_v57, %v602_v39  ;;  %v1747_v60 = vadd.f32 %v1740_v58, %v602_v39  ;;  %v1355_v61 = vpop.f32.mrb[3].mxu0  ;;  %v1742_v62 = vpop.f32.mrb[3].mxu1 }
 0x1af   : > { %v1361_v63 = vadd.f32 %v1355_v61, %v602_v39  ;;  %v1748_v0 = vadd.f32 %v1742_v62, %v602_v39 }
 0x1b0   : > { %vm1362_vm8 = vcmp.gt.f32.partialorder %v1360_v59, 0.0  ;;  %v1364_v1 = vmul.f32 %v1360_v59, %v608_v42  ;;  %vm1749_vm9 = vcmp.gt.f32.partialorder %v1747_v60, 0.0  ;;  %v1751_v2 = vmul.f32 %v1747_v60, %v608_v42 }
 0x1b1   : > { %vm1363_vm10 = vcmp.gt.f32.partialorder %v1361_v63, 0.0  ;;  %v1365_v3 = vmul.f32 %v1361_v63, %v608_v42  ;;  %vm1750_vm11 = vcmp.gt.f32.partialorder %v1748_v0, 0.0  ;;  %v1752_v4 = vmul.f32 %v1748_v0, %v608_v42 }
 0x1b2   : > { %v1366_v5 = vsel %vm1362_vm8, %v1360_v59, %v1364_v1  ;;  %v1753_v6 = vsel %vm1749_vm9, %v1747_v60, %v1751_v2 }
 0x1b3   : > { %1899 = vst [vmem:[%s2319_s30 + $0x20] sm:$0xff] %v1366_v5  ;;  %1925 = vst [vmem:[%s2319_s30 + $0x30] sm:$0xff] %v1753_v6  ;;  %v1367_v7 = vsel %vm1363_vm10, %v1361_v63, %v1365_v3  ;;  %v1754_v8 = vsel %vm1750_vm11, %v1748_v0, %v1752_v4 }
 0x1b4   : > { %1900 = vst [vmem:[%s2319_s30 + $0x28] sm:$0xff] %v1367_v7  ;;  %1926 = vst [vmem:[%s2319_s30 + $0x38] sm:$0xff] %v1754_v8 }
 0x1b5 PF: > { %p12_p9 = scmp.ge.s32.totalorder %s2062_s20, 4   ;;  %s2344_s17 = smov %s2007_s18 }
 0x1b6   : > { %s2345_s18 = smov %s2071_s23  ;;  %s2346_s19 = smov %s2062_s20 }
 0x1b7   :  { %14 = sbr.rel (!%p12_p9) target bundleno = 4 (0x4), region = 123 }

</bundles_post_ra>
